<compile_context>
chip_gen: v7x
topology: tpu7x:2x2x1
jax: 0.10.0
libtpu: 0.0.40
codegen_flags: <defaults>
</compile_context>

<pallas_src>
import functools

import jax
import jax.numpy as jnp
from jax.experimental import pallas as pl
from jax.experimental.pallas import tpu as pltpu


def _ffn_kernel(x_ref, w13_ref, w2_ref, o_ref, acc_ref):
    # x_ref:   (tm, D)       bf16 tile of tokens        (block (i, 0))
    # w13_ref: (D, 2*th)     bf16 [w1_tile | w3_tile]   (block (0, j))
    # w2_ref:  (th, D)       bf16 down-projection tile  (block (j, 0))
    # o_ref:   (tm, D)       output tile                (block (i, 0), revisited over j)
    # acc_ref: (tm, D) f32   VMEM accumulator (scratch)
    j = pl.program_id(1)

    @pl.when(j == 0)
    def _init():
        acc_ref[...] = jnp.zeros_like(acc_ref)

    th = w13_ref.shape[1] // 2
    x = x_ref[...]

    # Single fused gate+up GEMM for this H-tile; f32 accumulation on the MXU.
    h = jnp.dot(x, w13_ref[...], preferred_element_type=jnp.float32)
    h1 = h[:, :th]          # gate (lane-aligned static slice)
    h3 = h[:, th:]          # up

    # SiLU epilogue in f32 (single fused elementwise pass).
    g = (h1 * jax.nn.sigmoid(h1)) * h3

    # Partial down-projection for this H-tile; accumulate in f32.
    acc_ref[...] += jnp.dot(
        g.astype(w2_ref.dtype), w2_ref[...], preferred_element_type=jnp.float32
    )

    @pl.when(j == pl.num_programs(1) - 1)
    def _finalize():
        o_ref[...] = acc_ref[...].astype(o_ref.dtype)


def _round_up(x: int, m: int) -> int:
    return (x + m - 1) // m * m


@functools.partial(jax.jit, static_argnames=("tm", "th"))
def feed_forward(x, w1, w3, w2, *, tm=256, th=512):
    """x: (B, S, D); w1,w3: (D, H); w2: (H, D). Returns (B, S, D) in x.dtype."""
    B, S, D = x.shape
    H = w1.shape[1]
    M = B * S

    # ---- static tiling decisions (shapes are trace-time Python ints) ----
    tm = min(tm, _round_up(M, 128))            # don't over-tile tiny M; keep 128-aligned
    M_pad = _round_up(M, tm)

    th = min(th, H)
    if H % th != 0 or th % 128 != 0:
        th = H                                 # fall back to full hidden residency
    nh = H // th

    compute_dtype = jnp.bfloat16

    # ---- operand prep (one-time layout work in the wrapper) ----
    x2d = x.reshape(M, D).astype(compute_dtype)
    if M_pad != M:
        x2d = jnp.pad(x2d, ((0, M_pad - M), (0, 0)))

    w1b = w1.astype(compute_dtype)
    w3b = w3.astype(compute_dtype)
    w2b = w2.astype(compute_dtype)
    # Interleave per H-tile so block j of width 2*th is [w1 tile j | w3 tile j].
    w13 = jnp.concatenate(
        [w1b.reshape(D, nh, th), w3b.reshape(D, nh, th)], axis=2
    ).reshape(D, 2 * H)

    grid = (M_pad // tm, nh)

    out2d = pl.pallas_call(
        _ffn_kernel,
        out_shape=jax.ShapeDtypeStruct((M_pad, D), x.dtype),
        grid_spec=pltpu.PrefetchScalarGridSpec(
            num_scalar_prefetch=0,
            grid=grid,
            in_specs=[
                pl.BlockSpec((tm, D), lambda i, j: (i, 0)),       # x tokens tile
                pl.BlockSpec((D, 2 * th), lambda i, j: (0, j)),   # fused w1|w3 H-tile
                pl.BlockSpec((th, D), lambda i, j: (j, 0)),       # w2 H-tile
            ],
            out_specs=pl.BlockSpec((tm, D), lambda i, j: (i, 0)),
            scratch_shapes=[pltpu.VMEM((tm, D), jnp.float32)],
        ),
        compiler_params=pltpu.CompilerParams(
            dimension_semantics=("parallel", "arbitrary"),
            vmem_limit_bytes=48 * 1024 * 1024,   # streaming schedule fits v7x's 64 MiB
        ),
    )(x2d, w13, w2b)

    return out2d[:M].reshape(B, S, D)


def llama_hidden_dim(hidden_dim: int, multiple_of: int) -> int:
    hidden_dim = int(2 * hidden_dim / 3)
    return multiple_of * ((hidden_dim + multiple_of - 1) // multiple_of)


if __name__ == "__main__":
    # Small, Pallas-friendly shapes consistent with the module.
    batch, seq, dim = 2, 8, 128
    hidden_dim_arg, multiple_of = 256, 128
    H = llama_hidden_dim(hidden_dim_arg, multiple_of)   # -> 256

    key = jax.random.PRNGKey(0)
    kx, k1, k2, k3 = jax.random.split(key, 4)

    x = jax.random.normal(kx, (batch, seq, dim), dtype=jnp.float32)
    # nn.Linear(in, out, bias=False) weight is (out, in); we store transposed (in, out).
    scale1 = 1.0 / jnp.sqrt(dim)
    scale2 = 1.0 / jnp.sqrt(H)
    w1 = jax.random.uniform(k1, (dim, H), jnp.float32, -scale1, scale1)  # gate
    w3 = jax.random.uniform(k3, (dim, H), jnp.float32, -scale1, scale1)  # up
    w2 = jax.random.uniform(k2, (H, dim), jnp.float32, -scale2, scale2)  # down

    out = feed_forward(x, w1, w3, w2)
    jax.block_until_ready(out)

    # Pure-JAX f32 reference of the module semantics. Kernel runs the GEMMs in
    # bf16 with f32 accumulation, so compare with bf16-appropriate tolerance.
    h = jax.nn.silu(x @ w1) * (x @ w3)
    ref = h @ w2
    assert out.shape == (batch, seq, dim)
    assert jnp.allclose(out, ref, atol=5e-2, rtol=5e-2), "mismatch vs reference"

    print("KERNEL_OK")
</pallas_src>

<mosaic_0001>
module attributes {stable_mosaic.version = 11 : i64} {
  func.func @_ffn_kernel(%arg0: i32, %arg1: i32, %arg2: memref<128x128xbf16, #tpu.memory_space<vmem>>, %arg3: memref<128x512xbf16, #tpu.memory_space<vmem>>, %arg4: memref<256x128xbf16, #tpu.memory_space<vmem>>, %arg5: memref<128x128xf32, #tpu.memory_space<vmem>>, %arg6: memref<128x128xf32, #tpu.memory_space<vmem>>) attributes {dimension_semantics = [#tpu.dimension_semantics<parallel>, #tpu.dimension_semantics<arbitrary>], iteration_bounds = array<i64: 1, 1>, scalar_prefetch = 0 : i64, scratch_operands = 1 : i64, tpu.core_type = #tpu.core_type<tc>, window_params = [{transform_indices = @transform_0, window_bounds = array<i64: 128, 128>}, {transform_indices = @transform_1, window_bounds = array<i64: 128, 512>}, {transform_indices = @transform_2, window_bounds = array<i64: 256, 128>}, {transform_indices = @transform_3, window_bounds = array<i64: 128, 128>}]} {
    %c0_i32 = arith.constant 0 : i32
    %0 = arith.cmpi eq, %arg1, %c0_i32 : i32
    %1 = arith.extui %0 : i1 to i32
    %c0_i32_0 = arith.constant 0 : i32
    %2 = arith.cmpi ne, %1, %c0_i32_0 : i32
    scf.if %2 {
      %cst_14 = arith.constant 0.000000e+00 : f32
      %24 = vector.broadcast %cst_14 : f32 to vector<128x128xf32>
      %c0_15 = arith.constant 0 : index
      %c0_16 = arith.constant 0 : index
      %25 = vector.load %arg6[%c0_15, %c0_16] : memref<128x128xf32, #tpu.memory_space<vmem>>, vector<128x128xf32>
      tpu.vector_store %arg6[%c0_15, %c0_16], %24 {strides = array<i32>} : memref<128x128xf32, #tpu.memory_space<vmem>>, vector<128x128xf32>,
    } else {
    }
    %c0 = arith.constant 0 : index
    %c0_1 = arith.constant 0 : index
    %3 = vector.load %arg2[%c0, %c0_1] : memref<128x128xbf16, #tpu.memory_space<vmem>>, vector<128x128xbf16>
    %c0_2 = arith.constant 0 : index
    %c0_3 = arith.constant 0 : index
    %4 = vector.load %arg3[%c0_2, %c0_3] : memref<128x512xbf16, #tpu.memory_space<vmem>>, vector<128x512xbf16>
    %cst = arith.constant dense<0.000000e+00> : vector<128x512xf32>
    %5 = tpu.matmul %3, %4, %cst {dimension_numbers = #tpu.dot_dimension_numbers<[1], [0], [0], [1], [0, 0, 1, 1], [], []>} : vector<128x128xbf16>, vector<128x512xbf16>, vector<128x512xf32> -> vector<128x512xf32>
    %6 = vector.extract_strided_slice %5 {offsets = [0, 0], sizes = [128, 256], strides = [1, 1]} : vector<128x512xf32> to vector<128x256xf32>
    %7 = vector.extract_strided_slice %5 {offsets = [0, 256], sizes = [128, 256], strides = [1, 1]} : vector<128x512xf32> to vector<128x256xf32>
    %8 = arith.negf %6 : vector<128x256xf32>
    %9 = math.exp %8 : vector<128x256xf32>
    %cst_4 = arith.constant 1.000000e+00 : f32
    %10 = vector.broadcast %cst_4 : f32 to vector<128x256xf32>
    %11 = arith.addf %10, %9 : vector<128x256xf32>
    %12 = arith.divf %10, %11 : vector<128x256xf32>
    %13 = arith.mulf %6, %12 : vector<128x256xf32>
    %14 = arith.mulf %13, %7 : vector<128x256xf32>
    %c0_5 = arith.constant 0 : index
    %c0_6 = arith.constant 0 : index
    %15 = vector.load %arg6[%c0_5, %c0_6] : memref<128x128xf32, #tpu.memory_space<vmem>>, vector<128x128xf32>
    %16 = arith.truncf %14 : vector<128x256xf32> to vector<128x256xbf16>
    %c0_7 = arith.constant 0 : index
    %c0_8 = arith.constant 0 : index
    %17 = vector.load %arg4[%c0_7, %c0_8] : memref<256x128xbf16, #tpu.memory_space<vmem>>, vector<256x128xbf16>
    %cst_9 = arith.constant dense<0.000000e+00> : vector<128x128xf32>
    %18 = tpu.matmul %16, %17, %cst_9 {dimension_numbers = #tpu.dot_dimension_numbers<[1], [0], [0], [1], [0, 0, 1, 1], [], []>} : vector<128x256xbf16>, vector<256x128xbf16>, vector<128x128xf32> -> vector<128x128xf32>
    %19 = arith.addf %15, %18 : vector<128x128xf32>
    %c0_10 = arith.constant 0 : index
    %c0_11 = arith.constant 0 : index
    %20 = vector.load %arg6[%c0_10, %c0_11] : memref<128x128xf32, #tpu.memory_space<vmem>>, vector<128x128xf32>
    tpu.vector_store %arg6[%c0_10, %c0_11], %19 {strides = array<i32>} : memref<128x128xf32, #tpu.memory_space<vmem>>, vector<128x128xf32>,
    %c0_i32_12 = arith.constant 0 : i32
    %21 = arith.cmpi eq, %arg1, %c0_i32_12 : i32
    %22 = arith.extui %21 : i1 to i32
    %c0_i32_13 = arith.constant 0 : i32
    %23 = arith.cmpi ne, %22, %c0_i32_13 : i32
    scf.if %23 {
      %c0_14 = arith.constant 0 : index
      %c0_15 = arith.constant 0 : index
      %24 = vector.load %arg6[%c0_14, %c0_15] : memref<128x128xf32, #tpu.memory_space<vmem>>, vector<128x128xf32>
      %c0_16 = arith.constant 0 : index
      %c0_17 = arith.constant 0 : index
      %25 = vector.load %arg5[%c0_16, %c0_17] : memref<128x128xf32, #tpu.memory_space<vmem>>, vector<128x128xf32>
      tpu.vector_store %arg5[%c0_16, %c0_17], %24 {strides = array<i32>} : memref<128x128xf32, #tpu.memory_space<vmem>>, vector<128x128xf32>,
    } else {
    }
    return
  }
  func.func @transform_0(%arg0: i32, %arg1: i32) -> (i32, i32) {
    %c0_i32 = arith.constant 0 : i32
    %c0_i32_0 = arith.constant 0 : i32
    return %arg0, %c0_i32 : i32, i32
  }
  func.func @transform_1(%arg0: i32, %arg1: i32) -> (i32, i32) {
    %c0_i32 = arith.constant 0 : i32
    %c0_i32_0 = arith.constant 0 : i32
    return %c0_i32, %arg1 : i32, i32
  }
  func.func @transform_2(%arg0: i32, %arg1: i32) -> (i32, i32) {
    %c0_i32 = arith.constant 0 : i32
    %c0_i32_0 = arith.constant 0 : i32
    return %arg1, %c0_i32 : i32, i32
  }
  func.func @transform_3(%arg0: i32, %arg1: i32) -> (i32, i32) {
    %c0_i32 = arith.constant 0 : i32
    %c0_i32_0 = arith.constant 0 : i32
    return %arg0, %c0_i32 : i32, i32
  }
}

</mosaic_0001>

<bundles_post_ra>
// kernel: feed_forward.1
= control target key start
LH: loop header
LB: loop body
LE: loop exit
PB: predicated region body
PF: predicated region fallthrough
CT: control target
= control target key end

     0   :  { %v1470_v1 = vmov 0   ;;  %s1914_s1 = inlined_call_operand.vmem [shape: bf16[128,512], index: 1, kind: input, shape index: {}]   ;;  %s1915_s0 = inlined_call_operand.vmem [shape: bf16[128,128], index: 0, kind: input, shape index: {}]   ;;  %s1916_s2 = inlined_call_operand.vmem [shape: bf16[256,128], index: 2, kind: input, shape index: {}]   ;;  %s1917_s3 = inlined_call_operand.vmem [shape: f32[128,128], index: 3, kind: output, shape index: {}]  }
   0x1   :  { %v1270_v0 = vld [vmem:[%s1914_s1 + $0x4] ss:$16 sps:$4 sm:$0xff]   ;;  %323 = vmatprep.mubr.bf16.mxu0 %v1470_v1  ;;  %363 = vmatprep.mubr.bf16.mxu1 %v1470_v1  ;;  %v1272_v2 = vld [vmem:[%s1914_s1] ss:$16 sps:$4 sm:$0xff]   ;;  %v1298_v17 = vld [vmem:[%s1914_s1 + $0xc] ss:$16 sps:$4 sm:$0xff]  }
   0x2   :  { %291 = vmatprep.subr.bf16.mxu0 %v1270_v0  ;;  %1253 = vmatprep.subr.bf16.mxu1 %v1270_v0  ;;  %v1273_v3 = vld [vmem:[%s1914_s1 + $0x24] ss:$16 sps:$4 sm:$0xff]   ;;  %v1275_v4 = vld [vmem:[%s1914_s1 + $0x20] ss:$16 sps:$4 sm:$0xff]   ;;  %v1296_v20 = vld [vmem:[%s1914_s1 + $0x8] ss:$16 sps:$4 sm:$0xff]  }
   0x3   :  { %292 = vmatpush1.bf16.msra.mxu0 %v1272_v2  ;;  %1261 = vmatpush1.bf16.msra.mxu1 %v1272_v2  ;;  %v1276_v5 = vld [vmem:[%s1914_s1 + $0x44] ss:$16 sps:$4 sm:$0xff]   ;;  %v1278_v6 = vld [vmem:[%s1914_s1 + $0x40] ss:$16 sps:$4 sm:$0xff]   ;;  %v1301_v21 = vld [vmem:[%s1914_s1 + $0x2c] ss:$16 sps:$4 sm:$0xff]  }
   0x4   :  { %293 = vmatprep.subr.bf16.mxu0 %v1273_v3  ;;  %1254 = vmatprep.subr.bf16.mxu1 %v1273_v3  ;;  %v1279_v7 = vld [vmem:[%s1914_s1 + $0x64] ss:$16 sps:$4 sm:$0xff]   ;;  %v1281_v8 = vld [vmem:[%s1914_s1 + $0x60] ss:$16 sps:$4 sm:$0xff]   ;;  %v1299_v22 = vld [vmem:[%s1914_s1 + $0x28] ss:$16 sps:$4 sm:$0xff]  }
   0x5   :  { %v1282_v9 = vld [vmem:[%s1914_s1 + $0x84] ss:$16 sps:$4 sm:$0xff]   ;;  %v1284_v10 = vld [vmem:[%s1914_s1 + $0x80] ss:$16 sps:$4 sm:$0xff]   ;;  %v1306_v23 = vld [vmem:[%s1914_s1 + $0x4c] ss:$16 sps:$4 sm:$0xff]  }
   0x6   :  { %v1285_v11 = vld [vmem:[%s1914_s1 + $0xa4] ss:$16 sps:$4 sm:$0xff]   ;;  %v1287_v12 = vld [vmem:[%s1914_s1 + $0xa0] ss:$16 sps:$4 sm:$0xff]   ;;  %v1302_v24 = vld [vmem:[%s1915_s0 + $0x8] sm:$0xff]  }
   0x7   :  { %294 = vmatpush1.bf16.msra.mxu0 %v1275_v4  ;;  %1262 = vmatpush1.bf16.msra.mxu1 %v1275_v4  ;;  %v1288_v13 = vld [vmem:[%s1914_s1 + $0xc4] ss:$16 sps:$4 sm:$0xff]   ;;  %v1290_v14 = vld [vmem:[%s1914_s1 + $0xc0] ss:$16 sps:$4 sm:$0xff]   ;;  %v1303_v25 = vld [vmem:[%s1915_s0 + $0x28] sm:$0xff]  }
   0x8   :  { %295 = vmatprep.subr.bf16.mxu0 %v1276_v5  ;;  %1255 = vmatprep.subr.bf16.mxu1 %v1276_v5  ;;  %v1291_v15 = vld [vmem:[%s1914_s1 + $0xe4] ss:$16 sps:$4 sm:$0xff]   ;;  %v1293_v16 = vld [vmem:[%s1914_s1 + $0xe0] ss:$16 sps:$4 sm:$0xff]   ;;  %v1304_v26 = vld [vmem:[%s1914_s1 + $0x48] ss:$16 sps:$4 sm:$0xff]  }
   0x9   :  { %v1294_v18 = vld [vmem:[%s1915_s0] sm:$0xff]   ;;  %v1309_v27 = vld [vmem:[%s1914_s1 + $0x6c] ss:$16 sps:$4 sm:$0xff]   ;;  %v1307_v28 = vld [vmem:[%s1914_s1 + $0x68] ss:$16 sps:$4 sm:$0xff]  }
   0xa   :  { %v1295_v19 = vld [vmem:[%s1915_s0 + $0x20] sm:$0xff]   ;;  %v1314_v29 = vld [vmem:[%s1914_s1 + $0x8c] ss:$16 sps:$4 sm:$0xff]   ;;  %v1310_v30 = vld [vmem:[%s1915_s0 + $0x10] sm:$0xff]  }
   0xb   :  { %296 = vmatpush1.bf16.msra.mxu0 %v1278_v6  ;;  %1263 = vmatpush1.bf16.msra.mxu1 %v1278_v6  ;;  %v1311_v31 = vld [vmem:[%s1915_s0 + $0x30] sm:$0xff]   ;;  %v1312_v32 = vld [vmem:[%s1914_s1 + $0x88] ss:$16 sps:$4 sm:$0xff]   ;;  %v1317_v33 = vld [vmem:[%s1914_s1 + $0xac] ss:$16 sps:$4 sm:$0xff]  }
   0xc   :  { %297 = vmatprep.subr.bf16.mxu0 %v1279_v7  ;;  %1256 = vmatprep.subr.bf16.mxu1 %v1279_v7  ;;  %v1315_v34 = vld [vmem:[%s1914_s1 + $0xa8] ss:$16 sps:$4 sm:$0xff]   ;;  %v1322_v35 = vld [vmem:[%s1914_s1 + $0xcc] ss:$16 sps:$4 sm:$0xff]   ;;  %v1326_v41 = vld [vmem:[%s1916_s2 + $0x40] sm:$0xff]  }
   0xd   :  { %v1318_v36 = vld [vmem:[%s1915_s0 + $0x18] sm:$0xff]   ;;  %v1327_v42 = vld [vmem:[%s1916_s2] sm:$0xff]   ;;  %v1328_v43 = vld [vmem:[%s1916_s2 + $0x48] sm:$0xff]  }
   0xe   :  { %v1319_v37 = vld [vmem:[%s1915_s0 + $0x38] sm:$0xff]   ;;  %v1329_v44 = vld [vmem:[%s1916_s2 + $0x8] sm:$0xff]   ;;  %v1330_v45 = vld [vmem:[%s1916_s2 + $0x50] sm:$0xff]  }
   0xf   :  { %298 = vmatpush1.bf16.msra.mxu0 %v1281_v8  ;;  %1264 = vmatpush1.bf16.msra.mxu1 %v1281_v8  ;;  %v1320_v38 = vld [vmem:[%s1914_s1 + $0xc8] ss:$16 sps:$4 sm:$0xff]   ;;  %v1325_v39 = vld [vmem:[%s1914_s1 + $0xec] ss:$16 sps:$4 sm:$0xff]   ;;  %v1331_v46 = vld [vmem:[%s1916_s2 + $0x10] sm:$0xff]  }
  0x10   :  { %299 = vmatprep.subr.bf16.mxu0 %v1282_v9  ;;  %1257 = vmatprep.subr.bf16.mxu1 %v1282_v9  ;;  %v1323_v40 = vld [vmem:[%s1914_s1 + $0xe8] ss:$16 sps:$4 sm:$0xff]   ;;  %v1334_v49 = vld [vmem:[%s1916_s2 + $0x60] sm:$0xff]   ;;  %v1338_v53 = vld [vmem:[%s1916_s2 + $0x70] sm:$0xff]  }
  0x11   :  { %v1332_v47 = vld [vmem:[%s1916_s2 + $0x58] sm:$0xff]   ;;  %v1335_v50 = vld [vmem:[%s1916_s2 + $0x20] sm:$0xff]   ;;  %v1336_v51 = vld [vmem:[%s1916_s2 + $0x68] sm:$0xff]  }
  0x12   :  { %v1333_v48 = vld [vmem:[%s1916_s2 + $0x18] sm:$0xff]   ;;  %v1337_v52 = vld [vmem:[%s1916_s2 + $0x28] sm:$0xff]   ;;  %v1339_v54 = vld [vmem:[%s1916_s2 + $0x30] sm:$0xff]  }
  0x13   :  { %300 = vmatpush1.bf16.msra.mxu0 %v1284_v10  ;;  %1265 = vmatpush1.bf16.msra.mxu1 %v1284_v10  ;;  %v1340_v55 = vld [vmem:[%s1916_s2 + $0x78] sm:$0xff]  }
  0x14   :  { %301 = vmatprep.subr.bf16.mxu0 %v1285_v11  ;;  %1258 = vmatprep.subr.bf16.mxu1 %v1285_v11  ;;  %v1341_v56 = vld [vmem:[%s1916_s2 + $0x38] sm:$0xff]  }
  0x17   :  { %302 = vmatpush1.bf16.msra.mxu0 %v1287_v12  ;;  %1266 = vmatpush1.bf16.msra.mxu1 %v1287_v12 }
  0x18   :  { %303 = vmatprep.subr.bf16.mxu0 %v1288_v13  ;;  %1259 = vmatprep.subr.bf16.mxu1 %v1288_v13 }
  0x1b   :  { %304 = vmatpush1.bf16.msra.mxu0 %v1290_v14  ;;  %1267 = vmatpush1.bf16.msra.mxu1 %v1290_v14 }
  0x1c   :  { %305 = vmatprep.subr.bf16.mxu0 %v1291_v15  ;;  %1260 = vmatprep.subr.bf16.mxu1 %v1291_v15 }
  0x1f   :  { %306 = vmatpush1.bf16.msra.mxu0 %v1293_v16  ;;  %1268 = vmatpush1.bf16.msra.mxu1 %v1293_v16 }
  0x20   :  { %404 = vmatprep.subr.bf16.mxu1 %v1298_v17  ;;  %1189 = vmatprep.subr.bf16.mxu0 %v1326_v41 }
  0x22   :  { %324 = vmatmul.mubr.bf16.vlgmr.msra.gmra.mrb[0].mxu0 %v1294_v18  ;;  %364 = vmatmul.mubr.bf16.vlgmr.msra.gmra.mrb[0].mxu1 %v1295_v19 }
  0x23   :  { %405 = vmatpush1.bf16.msra.mxu1 %v1296_v20  ;;  %333 = vmatprep.mubr.bf16.mxu0 %v1470_v1 }
  0x24   :  { %406 = vmatprep.subr.bf16.mxu1 %v1301_v21  ;;  %373 = vmatprep.mubr.bf16.mxu1 %v1470_v1 }
  0x25   :  { %1190 = vmatpush3.bf16.msra.mxu0 %v1327_v42 }
  0x26   :  { %1191 = vmatprep.subr.bf16.mxu0 %v1328_v43 }
  0x27   :  { %407 = vmatpush1.bf16.msra.mxu1 %v1299_v22 }
  0x28   :  { %408 = vmatprep.subr.bf16.mxu1 %v1306_v23 }
  0x29   :  { %1192 = vmatpush3.bf16.msra.mxu0 %v1329_v44 }
  0x2a   :  { %334 = vmatmul.mubr.bf16.gmra.mrb[4].mxu0 %v1302_v24  ;;  %374 = vmatmul.mubr.bf16.gmra.mrb[4].mxu1 %v1303_v25 }
  0x2b   :  { %409 = vmatpush1.bf16.msra.mxu1 %v1304_v26  ;;  %343 = vmatprep.mubr.bf16.mxu0 %v1470_v1 }
  0x2c   :  { %410 = vmatprep.subr.bf16.mxu1 %v1309_v27  ;;  %383 = vmatprep.mubr.bf16.mxu1 %v1470_v1 }
  0x2d   :  { %1193 = vmatprep.subr.bf16.mxu0 %v1330_v45 }
  0x2e   :  { %1194 = vmatpush3.bf16.msra.mxu0 %v1331_v46 }
  0x2f   :  { %411 = vmatpush1.bf16.msra.mxu1 %v1307_v28  ;;  %1195 = vmatprep.subr.bf16.mxu0 %v1332_v47 }
  0x30   :  { %412 = vmatprep.subr.bf16.mxu1 %v1314_v29 }
  0x32   :  { %344 = vmatmul.mubr.bf16.gmra.mrb[8].mxu0 %v1310_v30  ;;  %384 = vmatmul.mubr.bf16.gmra.mrb[8].mxu1 %v1311_v31 }
  0x33   :  { %413 = vmatpush1.bf16.msra.mxu1 %v1312_v32  ;;  %353 = vmatprep.mubr.bf16.mxu0 %v1470_v1 }
  0x34   :  { %414 = vmatprep.subr.bf16.mxu1 %v1317_v33  ;;  %393 = vmatprep.mubr.bf16.mxu1 %v1470_v1 }
  0x35   :  { %1196 = vmatpush3.bf16.msra.mxu0 %v1333_v48 }
  0x36   :  { %1197 = vmatprep.subr.bf16.mxu0 %v1334_v49 }
  0x37   :  { %415 = vmatpush1.bf16.msra.mxu1 %v1315_v34 }
  0x38   :  { %416 = vmatprep.subr.bf16.mxu1 %v1322_v35 }
  0x39   :  { %1198 = vmatpush3.bf16.msra.mxu0 %v1335_v50 }
  0x3a   :  { %354 = vmatmul.mubr.bf16.gmra.mrb[12].mxu0 %v1318_v36  ;;  %394 = vmatmul.mubr.bf16.gmra.mrb[12].mxu1 %v1319_v37 }
  0x3b   :  { %417 = vmatpush1.bf16.msra.mxu1 %v1320_v38  ;;  %436 = vmatprep.mubr.bf16.mxu1 %v1470_v1 }
  0x3c   :  { %418 = vmatprep.subr.bf16.mxu1 %v1325_v39  ;;  %1199 = vmatprep.subr.bf16.mxu0 %v1336_v51 }
  0x3d   :  { %1200 = vmatpush3.bf16.msra.mxu0 %v1337_v52 }
  0x3e   :  { %1201 = vmatprep.subr.bf16.mxu0 %v1338_v53 }
  0x3f   :  { %419 = vmatpush1.bf16.msra.mxu1 %v1323_v40 }
  0x41   :  { %1202 = vmatpush3.bf16.msra.mxu0 %v1339_v54 }
  0x42   :  { %437 = vmatmul.mubr.bf16.vlgmr.msra.gmra.mrb[16].mxu1 %v1294_v18  ;;  %1203 = vmatprep.subr.bf16.mxu0 %v1340_v55 }
  0x43   :  { %446 = vmatprep.mubr.bf16.mxu1 %v1470_v1 }
  0x45   :  { %1204 = vmatpush3.bf16.msra.mxu0 %v1341_v56 }
  0x4a   :  { %447 = vmatmul.mubr.bf16.gmra.mrb[20].mxu1 %v1302_v24 }
  0x4b   :  { %456 = vmatprep.mubr.bf16.mxu1 %v1470_v1 }
  0x52   :  { %457 = vmatmul.mubr.bf16.gmra.mrb[24].mxu1 %v1310_v30 }
  0x53   :  { %466 = vmatprep.mubr.bf16.mxu1 %v1470_v1 }
  0x5a   :  { %467 = vmatmul.mubr.bf16.gmra.mrb[28].mxu1 %v1318_v36 }
  0x5b   :  { %476 = vmatprep.mubr.bf16.mxu1 %v1470_v1 }
  0x62   :  { %477 = vmatmul.mubr.bf16.gmra.mrb[32].mxu1 %v1295_v19 }
  0x63   :  { %486 = vmatprep.mubr.bf16.mxu1 %v1470_v1 }
  0x6a   :  { %487 = vmatmul.mubr.bf16.gmra.mrb[36].mxu1 %v1303_v25 }
  0x6b   :  { %496 = vmatprep.mubr.bf16.mxu1 %v1470_v1 }
  0x72   :  { %497 = vmatmul.mubr.bf16.gmra.mrb[40].mxu1 %v1311_v31 }
  0x73   :  { %506 = vmatprep.mubr.bf16.mxu1 %v1470_v1 }
  0x7a   :  { %507 = vmatmul.mubr.bf16.gmra.mrb[44].mxu1 %v1319_v37 }
  0xf5   :  { %v1675_v57 = vpop.f32.mrb[0].mxu0  ;;  %v1677_v58 = vpop.f32.mrb[0].mxu1 }
  0xf6   :  { %v1141_v59 = vmul.f32 -1.442695, %v1675_v57  ;;  %v1680_v60 = vpop.f32.mrb[1].mxu0  ;;  %v1682_v61 = vpop.f32.mrb[1].mxu1  ;;  %v1157_v5 = vmul.f32 -1.442695, %v1677_v58 }
  0xf7   :  { %v1142_v62 = vmul.f32 -1.442695, %v1680_v60  ;;  %v1685_v63 = vpop.f32.mrb[2].mxu0  ;;  %v1687_v0 = vpop.f32.mrb[2].mxu1  ;;  %v1158_v11 = vmul.f32 -1.442695, %v1682_v61 }
  0xf8   :  { %1342 = vpow2.f32 %v1141_v59  ;;  %v1143_v1 = vmul.f32 -1.442695, %v1685_v63  ;;  %v1690_v2 = vpop.f32.mrb[3].mxu0  ;;  %v1692_v3 = vpop.f32.mrb[3].mxu1  ;;  %v1159_v18 = vmul.f32 -1.442695, %v1687_v0 }
  0xf9   :  { %1344 = vpow2.f32 %v1142_v62  ;;  %v1144_v4 = vmul.f32 -1.442695, %v1690_v2  ;;  %v1160_v20 = vmul.f32 -1.442695, %v1692_v3 }
  0xfa   :  { %1346 = vpow2.f32 %v1143_v1 }
  0xfb   :  { %1348 = vpow2.f32 %v1144_v4 }
  0xfd   :  { %v1696_v6 = vpop.f32.mrb[4].mxu0  ;;  %v1698_v7 = vpop.f32.mrb[4].mxu1 }
  0xfe   :  { %v1145_v8 = vmul.f32 -1.442695, %v1696_v6  ;;  %v1701_v9 = vpop.f32.mrb[5].mxu0  ;;  %v1703_v10 = vpop.f32.mrb[5].mxu1  ;;  %v1161_v27 = vmul.f32 -1.442695, %v1698_v7 }
  0xff   :  { %v1146_v12 = vmul.f32 -1.442695, %v1701_v9  ;;  %v1707_v13 = vpop.f32.mrb[6].mxu0  ;;  %v1709_v14 = vpop.f32.mrb[6].mxu1  ;;  %v1162_v35 = vmul.f32 -1.442695, %v1703_v10 }
 0x100   :  { %1350 = vpow2.f32 %v1145_v8  ;;  %v1147_v15 = vmul.f32 -1.442695, %v1707_v13  ;;  %v1712_v16 = vpop.f32.mrb[7].mxu0  ;;  %v1714_v17 = vpop.f32.mrb[7].mxu1 }
 0x101   :  { %1352 = vpow2.f32 %v1157_v5  ;;  %v1148_v51 = vmul.f32 -1.442695, %v1712_v16 }
 0x102   :  { %v1343_v19 = vpop.eup %1342  ;;  %1354 = vpow2.f32 %v1146_v12 }
 0x103   :  { %v613_v21 = vadd.f32 1.0, %v1343_v19  ;;  %1356 = vpow2.f32 %v1158_v11  ;;  %v1345_v22 = vpop.eup %1344 }
 0x104   :  { %1358 = vpow2.f32 %v1147_v15  ;;  %v614_v23 = vadd.f32 1.0, %v1345_v22  ;;  %v1347_v26 = vpop.eup %1346 }
 0x105   :  { %1360 = vpow2.f32 %v1159_v18  ;;  %v1718_v24 = vpop.f32.mrb[8].mxu0  ;;  %v1720_v25 = vpop.f32.mrb[8].mxu1  ;;  %v615_v29 = vadd.f32 1.0, %v1347_v26 }
 0x106   :  { %1362 = vpow2.f32 %v1160_v20  ;;  %v1723_v28 = vpop.f32.mrb[9].mxu0  ;;  %v1725_v30 = vpop.f32.mrb[9].mxu1  ;;  %v1149_v1 = vmul.f32 -1.442695, %v1718_v24 }
 0x107   :  { %1364 = vrcp.f32 %v613_v21  ;;  %v1727_v31 = vpop.f32.mrb[10].mxu0  ;;  %v1349_v32 = vpop.eup %1348  ;;  %v1150_v12 = vmul.f32 -1.442695, %v1723_v28 }
 0x108   :  { %1366 = vrcp.f32 %v614_v23  ;;  %v1729_v33 = vpop.f32.mrb[10].mxu1  ;;  %v616_v34 = vadd.f32 1.0, %v1349_v32  ;;  %v1732_v36 = vpop.f32.mrb[11].mxu0  ;;  %v1151_v22 = vmul.f32 -1.442695, %v1727_v31 }
 0x109   :  { %1368 = vrcp.f32 %v615_v29  ;;  %v1734_v37 = vpop.f32.mrb[11].mxu1 }
 0x10a   :  { %v1351_v38 = vpop.eup %1350  ;;  %1370 = vpow2.f32 %v1161_v27  ;;  %v1163_v27 = vmul.f32 -1.442695, %v1709_v14 }
 0x10b   :  { %v1353_v39 = vpop.eup %1352  ;;  %1372 = vrcp.f32 %v616_v34  ;;  %v617_v40 = vadd.f32 1.0, %v1351_v38 }
 0x10c   :  { %v1355_v41 = vpop.eup %1354  ;;  %1374 = vpow2.f32 %v1162_v35  ;;  %v629_v47 = vadd.f32 1.0, %v1353_v39 }
 0x10d   :  { %v1357_v42 = vpop.eup %1356  ;;  %v618_v43 = vadd.f32 1.0, %v1355_v41  ;;  %v1736_v44 = vpop.f32.mrb[12].mxu0  ;;  %1376 = vrcp.f32 %v617_v40 }
 0x10e   :  { %v1738_v45 = vpop.f32.mrb[12].mxu1  ;;  %v1359_v46 = vpop.eup %1358  ;;  %v630_v55 = vadd.f32 1.0, %v1357_v42 }
 0x10f   :  { %v1740_v48 = vpop.f32.mrb[13].mxu0  ;;  %v1361_v49 = vpop.eup %1360  ;;  %v619_v50 = vadd.f32 1.0, %v1359_v46  ;;  %1378 = vrcp.f32 %v618_v43 }
 0x110   :  { %v1743_v52 = vpop.f32.mrb[13].mxu1  ;;  %v1745_v53 = vpop.f32.mrb[14].mxu0  ;;  %v631_v8 = vadd.f32 1.0, %v1361_v49 }
 0x111   :  { %v1363_v54 = vpop.eup %1362  ;;  %v1747_v56 = vpop.f32.mrb[14].mxu1  ;;  %1380 = vrcp.f32 %v619_v50 }
 0x112   :  { %v1749_v59 = vpop.f32.mrb[15].mxu0  ;;  %v1365_v62 = vpop.eup %1364  ;;  %1382 = vrcp.f32 %v629_v47  ;;  %v632_v19 = vadd.f32 1.0, %v1363_v54 }
 0x113   :  { %v1752_v4 = vpop.f32.mrb[15].mxu1  ;;  %v1367_v5 = vpop.eup %1366  ;;  %1384 = vpow2.f32 %v1148_v51  ;;  %v709_v18 = vmul.f32 %v1365_v62, %v1675_v57  ;;  %v1152_v57 = vmul.f32 -1.442695, %v1732_v36 }
 0x114   :  { %v1369_v11 = vpop.eup %1368  ;;  %1386 = vrcp.f32 %v630_v55  ;;  %v710_v21 = vmul.f32 %v1367_v5, %v1680_v60  ;;  %v1165_v5 = vmul.f32 -1.442695, %v1720_v25 }
 0x115   :  { %v1371_v15 = vpop.eup %1370  ;;  %1388 = vpow2.f32 %v1149_v1  ;;  %v438_v23 = vpop.f32.mrb[16].mxu1  ;;  %v711_v26 = vmul.f32 %v1369_v11, %v1685_v63  ;;  %v1153_v63 = vmul.f32 -1.442695, %v1736_v44 }
 0x116   :  { %v1373_v20 = vpop.eup %1372  ;;  %1390 = vrcp.f32 %v631_v8  ;;  %v741_v29 = vmul.f32 %v709_v18, %v438_v23  ;;  %v440_v32 = vpop.f32.mrb[17].mxu1  ;;  %v633_v60 = vadd.f32 1.0, %v1371_v15 }
 0x117   :  { %v1375_v34 = vpop.eup %1374  ;;  %v712_v35 = vmul.f32 %v1373_v20, %v1690_v2  ;;  %1392 = vpow2.f32 %v1150_v12  ;;  %v742_v38 = vmul.f32 %v710_v21, %v440_v32  ;;  %v442_v39 = vpop.f32.mrb[18].mxu1  ;;  %v1164_v2 = vmul.f32 -1.442695, %v1714_v17 }
 0x118   :  { %1394 = vrcp.f32 %v632_v19  ;;  %v743_v40 = vmul.f32 %v711_v26, %v442_v39  ;;  %v444_v41 = vpop.f32.mrb[19].mxu1  ;;  %v1377_v42 = vpop.eup %1376  ;;  %v634_v47 = vadd.f32 1.0, %v1375_v34  ;;  %v1166_v20 = vmul.f32 -1.442695, %v1725_v30 }
 0x119   :  { %1396 = vpow2.f32 %v1151_v22  ;;  %v744_v43 = vmul.f32 %v712_v35, %v444_v41  ;;  %v1379_v46 = vpop.eup %1378  ;;  %v713_v55 = vmul.f32 %v1377_v42, %v1696_v6  ;;  %v1169_v41 = vmul.f32 -1.442695, %v1738_v45 }
 0x11a   :  { %1398 = vpow2.f32 %v1163_v27  ;;  %v789_v49 = vpack.c.bf16 %v743_v40, %v741_v29  ;;  %v714_v1 = vmul.f32 %v1379_v46, %v1701_v9  ;;  %v1167_v29 = vmul.f32 -1.442695, %v1729_v33 }
 0x11b   :  { %v1381_v50 = vpop.eup %1380  ;;  %1400 = vpow2.f32 %v1152_v57  ;;  %v790_v51 = vpack.c.bf16 %v744_v43, %v742_v38  ;;  %v1168_v38 = vmul.f32 -1.442695, %v1734_v37 }
 0x11c   :  { %v1764_v54 = vpop.eup %1382  ;;  %1402 = vrcp.f32 %v633_v60  ;;  %v715_v12 = vmul.f32 %v1381_v50, %v1707_v13 }
 0x11d   :  { %v1385_v62 = vpop.eup %1384  ;;  %1404 = vpow2.f32 %v1153_v63  ;;  %v448_v8 = vpop.f32.mrb[20].mxu1  ;;  %965 = vmatprep.mubr.bf16.mxu0 %v790_v51 }
 0x11e   :  { %v1769_v11 = vpop.eup %1386  ;;  %1406 = vrcp.f32 %v634_v47  ;;  %v620_v15 = vadd.f32 1.0, %v1385_v62  ;;  %v1772_v18 = vmul.f32 %v713_v55, %v448_v8  ;;  %v450_v19 = vpop.f32.mrb[21].mxu1  ;;  %966 = vmatmul.mubr.bf16.vlgmr.msra.gmra.mrb[16].mxu0 %v789_v49  ;;  %v1154_v55 = vmul.f32 -1.442695, %v1740_v48 }
 0x11f   :  { %v1389_v6 = vpop.eup %1388  ;;  %1408 = vpow2.f32 %v1164_v2  ;;  %v1775_v9 = vmul.f32 %v714_v1, %v450_v19  ;;  %v452_v21 = vpop.f32.mrb[22].mxu1 }
 0x120   :  { %v1777_v22 = vpop.eup %1390  ;;  %1410 = vrcp.f32 %v620_v15  ;;  %v621_v23 = vadd.f32 1.0, %v1389_v6  ;;  %v1779_v26 = vmul.f32 %v715_v12, %v452_v21  ;;  %v454_v27 = vpop.f32.mrb[23].mxu1  ;;  %v1155_v12 = vmul.f32 -1.442695, %v1745_v53 }
 0x121   :  { %v1393_v13 = vpop.eup %1392  ;;  %1412 = vpow2.f32 %v1165_v5  ;;  %v1170_v5 = vmul.f32 -1.442695, %v1743_v52  ;;  %v1171_v6 = vmul.f32 -1.442695, %v1747_v56  ;;  %v1156_v21 = vmul.f32 -1.442695, %v1749_v59 }
 0x122   :  { %v1782_v32 = vpop.eup %1394  ;;  %1414 = vrcp.f32 %v621_v23  ;;  %v622_v34 = vadd.f32 1.0, %v1393_v13  ;;  %v791_v35 = vpack.c.bf16 %v1779_v26, %v1772_v18 }
 0x123   :  { %v1397_v57 = vpop.eup %1396  ;;  %1416 = vpow2.f32 %v1166_v20 }
 0x124   :  { %v1399_v39 = vpop.eup %1398  ;;  %1418 = vrcp.f32 %v622_v34  ;;  %v623_v60 = vadd.f32 1.0, %v1397_v57 }
 0x125   :  { %v1401_v40 = vpop.eup %1400  ;;  %1420 = vpow2.f32 %v1167_v29  ;;  %v458_v42 = vpop.f32.mrb[24].mxu1  ;;  %v635_v49 = vadd.f32 1.0, %v1399_v39  ;;  %v1172_v29 = vmul.f32 -1.442695, %v1752_v4 }
 0x126   :  { %v1788_v63 = vpop.eup %1402  ;;  %1422 = vrcp.f32 %v623_v60  ;;  %v624_v43 = vadd.f32 1.0, %v1401_v40  ;;  %v460_v46 = vpop.f32.mrb[25].mxu1 }
 0x127   :  { %v1405_v47 = vpop.eup %1404  ;;  %1424 = vpow2.f32 %v1168_v38  ;;  %v462_v50 = vpop.f32.mrb[26].mxu1 }
 0x128   :  { %v1790_v2 = vpop.eup %1406  ;;  %1426 = vrcp.f32 %v624_v43  ;;  %v625_v51 = vadd.f32 1.0, %v1405_v47  ;;  %v464_v62 = vpop.f32.mrb[27].mxu1 }
 0x129   :  { %v1409_v1 = vpop.eup %1408  ;;  %1428 = vpow2.f32 %v1169_v41 }
 0x12a   :  { %v1411_v8 = vpop.eup %1410  ;;  %1430 = vrcp.f32 %v625_v51  ;;  %v636_v39 = vadd.f32 1.0, %v1409_v1 }
 0x12b   :  { %v1413_v15 = vpop.eup %1412  ;;  %1432 = vrcp.f32 %v635_v49  ;;  %v716_v19 = vmul.f32 %v1411_v8, %v1712_v16 }
 0x12c   :  { %v1415_v20 = vpop.eup %1414  ;;  %1434 = vpow2.f32 %v1154_v55  ;;  %v637_v51 = vadd.f32 1.0, %v1413_v15  ;;  %v725_v15 = vmul.f32 %v1764_v54, %v1677_v58 }
 0x12d   :  { %v1417_v23 = vpop.eup %1416  ;;  %v717_v13 = vmul.f32 %v1415_v20, %v1718_v24  ;;  %1436 = vpow2.f32 %v1170_v5  ;;  %v748_v34 = vmul.f32 %v716_v19, %v454_v27  ;;  %v468_v57 = vpop.f32.mrb[28].mxu1 }
 0x12e   :  { %v1419_v38 = vpop.eup %1418  ;;  %1438 = vpow2.f32 %v1155_v12  ;;  %v1800_v60 = vpop.f32.mrb[29].mxu1 }
 0x12f   :  { %v1421_v16 = vpop.eup %1420  ;;  %v718_v40 = vmul.f32 %v1419_v38, %v1723_v28  ;;  %1440 = vpow2.f32 %v1171_v6  ;;  %v792_v41 = vpack.c.bf16 %v748_v34, %v1775_v9  ;;  %v749_v43 = vmul.f32 %v717_v13, %v458_v42  ;;  %v1804_v47 = vpop.f32.mrb[30].mxu1 }
 0x130   :  { %v1423_v24 = vpop.eup %1422  ;;  %1442 = vpow2.f32 %v1156_v21  ;;  %v1806_v49 = vpop.f32.mrb[31].mxu1  ;;  %v638_v28 = vadd.f32 1.0, %v1417_v23  ;;  %v639_v19 = vadd.f32 1.0, %v1421_v16 }
 0x131   :  { %v1425_v27 = vpop.eup %1424  ;;  %v719_v55 = vmul.f32 %v1423_v24, %v1727_v31  ;;  %1444 = vpow2.f32 %v1172_v29  ;;  %973 = vmatprep.mubr.bf16.mxu0 %v792_v41  ;;  %v750_v1 = vmul.f32 %v718_v40, %v460_v46  ;;  %v726_v31 = vmul.f32 %v1769_v11, %v1682_v61 }
 0x132   :  { %v1427_v5 = vpop.eup %1426  ;;  %1446 = vrcp.f32 %v636_v39  ;;  %974 = vmatmul.mubr.bf16.gmra.mrb[20].mxu0 %v791_v35  ;;  %v727_v46 = vmul.f32 %v1777_v22, %v1687_v0  ;;  %v640_v58 = vadd.f32 1.0, %v1425_v27  ;;  %v729_v24 = vmul.f32 %v1788_v63, %v1698_v7 }
 0x133   :  { %v1429_v9 = vpop.eup %1428  ;;  %v720_v42 = vmul.f32 %v1427_v5, %v1732_v36  ;;  %v751_v8 = vmul.f32 %v719_v55, %v462_v50  ;;  %1448 = vrcp.f32 %v637_v51  ;;  %v728_v50 = vmul.f32 %v1782_v32, %v1692_v3 }
 0x134   :  { %v1431_v12 = vpop.eup %1430  ;;  %1450 = vrcp.f32 %v638_v28  ;;  %v641_v16 = vadd.f32 1.0, %v1429_v9  ;;  %v730_v51 = vmul.f32 %v1790_v2, %v1703_v10 }
 0x135   :  { %v1433_v6 = vpop.eup %1432  ;;  %v721_v18 = vmul.f32 %v1431_v12, %v1736_v44  ;;  %v793_v26 = vpack.c.bf16 %v751_v8, %v749_v43  ;;  %v752_v35 = vmul.f32 %v720_v42, %v464_v62  ;;  %v478_v20 = vpop.f32.mrb[32].mxu1  ;;  %1452 = vrcp.f32 %v639_v19 }
 0x136   :  { %v1435_v36 = vpop.eup %1434  ;;  %v1822_v54 = vmul.f32 %v725_v15, %v478_v20  ;;  %v480_v61 = vpop.f32.mrb[33].mxu1  ;;  %v731_v5 = vmul.f32 %v1433_v6, %v1709_v14 }
 0x137   :  { %v1437_v11 = vpop.eup %1436  ;;  %v626_v21 = vadd.f32 1.0, %v1435_v36  ;;  %v794_v0 = vpack.c.bf16 %v752_v35, %v750_v1  ;;  %v1824_v22 = vmul.f32 %v721_v18, %v468_v57  ;;  %v1826_v23 = vmul.f32 %v726_v31, %v480_v61  ;;  %v482_v44 = vpop.f32.mrb[34].mxu1 }
 0x138   :  { %v1439_v13 = vpop.eup %1438  ;;  %v1828_v62 = vmul.f32 %v727_v46, %v482_v44  ;;  %v484_v29 = vpop.f32.mrb[35].mxu1  ;;  %v642_v27 = vadd.f32 1.0, %v1437_v11 }
 0x139   :  { %v1441_v34 = vpop.eup %1440  ;;  %1454 = vrcp.f32 %v626_v21  ;;  %v627_v3 = vadd.f32 1.0, %v1439_v13  ;;  %981 = vmatprep.mubr.bf16.mxu0 %v794_v0  ;;  %v1830_v32 = vmul.f32 %v728_v50, %v484_v29 }
 0x13a   :  { %v1443_v38 = vpop.eup %1442  ;;  %1456 = vrcp.f32 %v640_v58  ;;  %982 = vmatmul.mubr.bf16.gmra.mrb[24].mxu0 %v793_v26  ;;  %v797_v57 = vpack.c.bf16 %v1828_v62, %v1822_v54  ;;  %v643_v55 = vadd.f32 1.0, %v1441_v34 }
 0x13b   :  { %v1445_v39 = vpop.eup %1444  ;;  %1458 = vrcp.f32 %v627_v3  ;;  %v628_v40 = vadd.f32 1.0, %v1443_v38  ;;  %v798_v41 = vpack.c.bf16 %v1830_v32, %v1826_v23 }
 0x13c   :  { %v1447_v43 = vpop.eup %1446  ;;  %v644_v28 = vadd.f32 1.0, %v1445_v39 }
 0x13d   :  { %1460 = vrcp.f32 %v628_v40  ;;  %v488_v1 = vpop.f32.mrb[36].mxu1  ;;  %v1449_v8 = vpop.eup %1448  ;;  %v732_v12 = vmul.f32 %v1447_v43, %v1714_v17 }
 0x13e   :  { %v1841_v9 = vmul.f32 %v729_v24, %v488_v1  ;;  %v490_v42 = vpop.f32.mrb[37].mxu1  ;;  %1462 = vrcp.f32 %v641_v16  ;;  %v1451_v7 = vpop.eup %1450  ;;  %v733_v26 = vmul.f32 %v1449_v8, %v1720_v25 }
 0x13f   :  { %v762_v15 = vmul.f32 %v730_v51, %v490_v42  ;;  %v492_v31 = vpop.f32.mrb[38].mxu1  ;;  %1464 = vrcp.f32 %v642_v27  ;;  %v1453_v2 = vpop.eup %1452  ;;  %v734_v20 = vmul.f32 %v1451_v7, %v1725_v30 }
 0x140   :  { %v763_v63 = vmul.f32 %v731_v5, %v492_v31  ;;  %v494_v46 = vpop.f32.mrb[39].mxu1  ;;  %1466 = vrcp.f32 %v643_v55  ;;  %v735_v50 = vmul.f32 %v1453_v2, %v1729_v33 }
 0x141   :  { %v764_v10 = vmul.f32 %v732_v12, %v494_v46  ;;  %1468 = vrcp.f32 %v644_v28 }
 0x142   :  { %v799_v14 = vpack.c.bf16 %v763_v63, %v1841_v9 }
 0x143   :  { %v1455_v19 = vpop.eup %1454  ;;  %v800_v6 = vpack.c.bf16 %v764_v10, %v762_v15 }
 0x144   :  { %v1457_v18 = vpop.eup %1456  ;;  %v722_v17 = vmul.f32 %v1455_v19, %v1740_v48 }
 0x145   :  { %v1459_v35 = vpop.eup %1458  ;;  %v498_v36 = vpop.f32.mrb[40].mxu1  ;;  %v736_v44 = vmul.f32 %v1457_v18, %v1734_v37 }
 0x146   :  { %v723_v58 = vmul.f32 %v1459_v35, %v1745_v53  ;;  %v754_v61 = vmul.f32 %v722_v17, %v1800_v60  ;;  %v765_v11 = vmul.f32 %v733_v26, %v498_v36  ;;  %v500_v21 = vpop.f32.mrb[41].mxu1 }
 0x147   :  { %v1461_v0 = vpop.eup %1460  ;;  %v766_v13 = vmul.f32 %v734_v20, %v500_v21  ;;  %v502_v29 = vpop.f32.mrb[42].mxu1 }
 0x148   :  { %v724_v25 = vmul.f32 %v1461_v0, %v1749_v59  ;;  %v755_v48 = vmul.f32 %v723_v58, %v1804_v47  ;;  %v767_v34 = vmul.f32 %v735_v50, %v502_v29  ;;  %v504_v30 = vpop.f32.mrb[43].mxu1  ;;  %v1463_v3 = vpop.eup %1462 }
 0x149   :  { %v768_v38 = vmul.f32 %v736_v44, %v504_v30  ;;  %v1465_v33 = vpop.eup %1464  ;;  %v737_v37 = vmul.f32 %v1463_v3, %v1738_v45 }
 0x14a   :  { %v795_v53 = vpack.c.bf16 %v755_v48, %v1824_v22  ;;  %v756_v60 = vmul.f32 %v724_v25, %v1806_v49  ;;  %v801_v39 = vpack.c.bf16 %v767_v34, %v765_v11  ;;  %v1467_v16 = vpop.eup %1466  ;;  %v738_v59 = vmul.f32 %v1465_v33, %v1743_v52 }
 0x14b   :  { %v802_v40 = vpack.c.bf16 %v768_v38, %v766_v13  ;;  %v1469_v43 = vpop.eup %1468  ;;  %v739_v47 = vmul.f32 %v1467_v16, %v1747_v56 }
 0x14c   :  { %v796_v24 = vpack.c.bf16 %v756_v60, %v754_v61  ;;  %v740_v1 = vmul.f32 %v1469_v43, %v1752_v4 }
 0x14d   :  { %v508_v27 = vpop.f32.mrb[44].mxu1 }
 0x14e   :  { %989 = vmatprep.mubr.bf16.mxu0 %v796_v24  ;;  %v769_v51 = vmul.f32 %v737_v37, %v508_v27  ;;  %v510_v55 = vpop.f32.mrb[45].mxu1 }
 0x14f   :  { %990 = vmatmul.mubr.bf16.gmra.mrb[28].mxu0 %v795_v53  ;;  %v770_v22 = vmul.f32 %v738_v59, %v510_v55  ;;  %v512_v49 = vpop.f32.mrb[46].mxu1 }
 0x150   :  { %997 = vmatprep.mubr.bf16.mxu0 %v798_v41  ;;  %v771_v5 = vmul.f32 %v739_v47, %v512_v49  ;;  %v514_v45 = vpop.f32.mrb[47].mxu1 }
 0x151   :  { %v772_v28 = vmul.f32 %v740_v1, %v514_v45 }
 0x152   :  { %v803_v9 = vpack.c.bf16 %v771_v5, %v769_v51 }
 0x153   :  { %v804_v52 = vpack.c.bf16 %v772_v28, %v770_v22 }
 0x157   :  { %998 = vmatmul.mubr.bf16.gmra.mrb[32].mxu0 %v797_v57 }
 0x158   :  { %1005 = vmatprep.mubr.bf16.mxu0 %v800_v6 }
 0x15f   :  { %1006 = vmatmul.mubr.bf16.gmra.mrb[36].mxu0 %v799_v14 }
 0x160   :  { %1013 = vmatprep.mubr.bf16.mxu0 %v802_v40 }
 0x167   :  { %1014 = vmatmul.mubr.bf16.gmra.mrb[40].mxu0 %v801_v39 }
 0x168   :  { %1021 = vmatprep.mubr.bf16.mxu0 %v804_v52 }
 0x16f   :  { %1022 = vmatmul.mubr.bf16.gmra.mrb[44].mxu0 %v803_v9 }
 0x1f1   :  { %v1205_v56 = vpop.f32.mrb[16].mxu0 }
 0x1f2   :  { %v1206_v4 = vpop.f32.mrb[17].mxu0 }
 0x1f3   :  { %v1207_v42 = vadd.f32 %v1206_v4, %v1205_v56  ;;  %v1208_v23 = vpop.f32.mrb[18].mxu0 }
 0x1f4   :  { %v1209_v32 = vpop.f32.mrb[19].mxu0 }
 0x1f5   :  { %1081 = vst [vmem:[%s1917_s3] sm:$0xff] %v1207_v42  ;;  %v1210_v41 = vadd.f32 %v1209_v32, %v1208_v23 }
 0x1f7   :  { %1082 = vst [vmem:[%s1917_s3 + $0x8] sm:$0xff] %v1210_v41 }
 0x205   :  { %v1211_v54 = vpop.f32.mrb[20].mxu0 }
 0x206   :  { %v1212_v62 = vpop.f32.mrb[21].mxu0 }
 0x207   :  { %v1213_v57 = vadd.f32 %v1212_v62, %v1211_v54  ;;  %v1214_v8 = vpop.f32.mrb[22].mxu0 }
 0x208   :  { %v1215_v12 = vpop.f32.mrb[23].mxu0 }
 0x209   :  { %1083 = vst [vmem:[%s1917_s3 + $0x10] sm:$0xff] %v1213_v57  ;;  %v1216_v15 = vadd.f32 %v1215_v12, %v1214_v8 }
 0x20b   :  { %1084 = vst [vmem:[%s1917_s3 + $0x18] sm:$0xff] %v1216_v15 }
 0x20d   :  { %v1217_v31 = vpop.f32.mrb[24].mxu0 }
 0x20e   :  { %v1218_v7 = vpop.f32.mrb[25].mxu0 }
 0x20f   :  { %v1219_v63 = vadd.f32 %v1218_v7, %v1217_v31  ;;  %v1220_v46 = vpop.f32.mrb[26].mxu0 }
 0x210   :  { %v1221_v10 = vpop.f32.mrb[27].mxu0 }
 0x211   :  { %1085 = vst [vmem:[%s1917_s3 + $0x20] sm:$0xff] %v1219_v63  ;;  %v1222_v2 = vadd.f32 %v1221_v10, %v1220_v46 }
 0x213   :  { %1086 = vst [vmem:[%s1917_s3 + $0x28] sm:$0xff] %v1222_v2 }
 0x222   :  { %v1223_v14 = vpop.f32.mrb[28].mxu0 }
 0x223   :  { %v1224_v19 = vpop.f32.mrb[29].mxu0 }
 0x224   :  { %v1225_v6 = vadd.f32 %v1224_v19, %v1223_v14  ;;  %v1226_v18 = vpop.f32.mrb[30].mxu0 }
 0x225   :  { %v1227_v26 = vpop.f32.mrb[31].mxu0 }
 0x226   :  { %1087 = vst [vmem:[%s1917_s3 + $0x30] sm:$0xff] %v1225_v6  ;;  %v1228_v17 = vadd.f32 %v1227_v26, %v1226_v18 }
 0x228   :  { %1088 = vst [vmem:[%s1917_s3 + $0x38] sm:$0xff] %v1228_v17 }
 0x22a   :  { %v1229_v35 = vpop.f32.mrb[32].mxu0 }
 0x22b   :  { %v1230_v20 = vpop.f32.mrb[33].mxu0 }
 0x22c   :  { %v1231_v36 = vadd.f32 %v1230_v20, %v1229_v35  ;;  %v1232_v50 = vpop.f32.mrb[34].mxu0 }
 0x22d   :  { %v1233_v58 = vpop.f32.mrb[35].mxu0 }
 0x22e   :  { %1089 = vst [vmem:[%s1917_s3 + $0x40] sm:$0xff] %v1231_v36  ;;  %v1234_v61 = vadd.f32 %v1233_v58, %v1232_v50 }
 0x230   :  { %1090 = vst [vmem:[%s1917_s3 + $0x48] sm:$0xff] %v1234_v61 }
 0x232   :  { %v1235_v11 = vpop.f32.mrb[36].mxu0 }
 0x233   :  { %v1236_v21 = vpop.f32.mrb[37].mxu0 }
 0x234   :  { %v1237_v0 = vadd.f32 %v1236_v21, %v1235_v11  ;;  %v1238_v44 = vpop.f32.mrb[38].mxu0 }
 0x235   :  { %v1239_v13 = vpop.f32.mrb[39].mxu0 }
 0x236   :  { %1091 = vst [vmem:[%s1917_s3 + $0x50] sm:$0xff] %v1237_v0  ;;  %v1240_v29 = vadd.f32 %v1239_v13, %v1238_v44 }
 0x238   :  { %1092 = vst [vmem:[%s1917_s3 + $0x58] sm:$0xff] %v1240_v29 }
 0x23a   :  { %v1241_v25 = vpop.f32.mrb[40].mxu0 }
 0x23b   :  { %v1242_v48 = vpop.f32.mrb[41].mxu0 }
 0x23c   :  { %v1243_v34 = vadd.f32 %v1242_v48, %v1241_v25  ;;  %v1244_v30 = vpop.f32.mrb[42].mxu0 }
 0x23d   :  { %v1245_v3 = vpop.f32.mrb[43].mxu0 }
 0x23e   :  { %1093 = vst [vmem:[%s1917_s3 + $0x60] sm:$0xff] %v1243_v34  ;;  %v1246_v38 = vadd.f32 %v1245_v3, %v1244_v30 }
 0x240   :  { %1094 = vst [vmem:[%s1917_s3 + $0x68] sm:$0xff] %v1246_v38 }
 0x242   :  { %v1247_v33 = vpop.f32.mrb[44].mxu0 }
 0x243   :  { %v1248_v53 = vpop.f32.mrb[45].mxu0 }
 0x244   :  { %v1249_v60 = vadd.f32 %v1248_v53, %v1247_v33  ;;  %v1250_v39 = vpop.f32.mrb[46].mxu0 }
 0x245   :  { %v1251_v16 = vpop.f32.mrb[47].mxu0 }
 0x246   :  { %1095 = vst [vmem:[%s1917_s3 + $0x70] sm:$0xff] %v1249_v60  ;;  %v1252_v40 = vadd.f32 %v1251_v16, %v1250_v39 }
 0x248   :  { %1096 = vst [vmem:[%s1917_s3 + $0x78] sm:$0xff] %v1252_v40 }

</bundles_post_ra>
